<compile_context>
chip_gen: v5e
topology: v5e:2x2
jax: 0.10.0
libtpu: 0.0.40
codegen_flags: <defaults>
</compile_context>

<pallas_src>
import functools

import jax
import jax.numpy as jnp
from jax.experimental import pallas as pl
from jax.experimental.pallas import tpu as pltpu

_LANES = 128
# (2048, 128) f32 tile: 1 MiB/array; 1 in + 5 f32 out + 3 bool out ~= 6.75 MiB
# per buffer set, ~13.5 MiB double-buffered -> fits the 32 MiB limit on every
# generation (incl. v7x's 64 MiB physical VMEM) with headroom.
_MAX_TILE_ROWS = 2048
# Below this many rows a single block is cheaper than splitting (per-step
# overhead ~0.35 us x 9 DMA streams dominates).
_MIN_TILE_ROWS = 256
# Aim for >= this many grid blocks on large inputs (dual-TC sharding on v7x,
# better DMA/compute overlap everywhere).
_TARGET_BLOCKS = 8
# Below this, a fused XLA elementwise op beats the pallas_call launch cost.
_MIN_PALLAS_ELEMS = 1 << 16


def _elementwise_kernel(x_ref, r1, r2, r3, r4, r5, r6, r7, r8):
    x = x_ref[...]
    r1[...] = x + 5.0
    r2[...] = x - 3.0
    r3[...] = x * 2.0
    r4[...] = x * 0.5          # x / 2 as a single VPU multiply
    r5[...] = x * x
    r6[...] = x > 0.0          # bool outputs written in-kernel
    r7[...] = x < 10.0
    r8[...] = x == 5.0


def _jnp_ops(x):
    """Plain-JAX fallback / tail path with identical semantics."""
    return (x + 5.0, x - 3.0, x * 2.0, x * 0.5, x * x,
            x > 0.0, x < 10.0, x == 5.0)


def _pick_tile_rows(rows):
    """Largest VMEM-safe tile that still yields a multi-block grid."""
    if rows <= _MIN_TILE_ROWS:
        return rows                              # single full-array block
    target = -(-rows // _TARGET_BLOCKS)          # ceil(rows / target_blocks)
    target = ((target + 31) // 32) * 32          # multiple of 32 (f32 + int8 tiling)
    return max(_MIN_TILE_ROWS, min(target, _MAX_TILE_ROWS))


def _run_pallas_2d(x2d):
    rows = x2d.shape[0]
    tile_r = _pick_tile_rows(rows)
    grid = (pl.cdiv(rows, tile_r),)

    spec = pl.BlockSpec((tile_r, _LANES), lambda i: (i, 0))
    f_out = jax.ShapeDtypeStruct((rows, _LANES), x2d.dtype)
    b_out = jax.ShapeDtypeStruct((rows, _LANES), jnp.bool_)

    n = rows * _LANES
    return pl.pallas_call(
        _elementwise_kernel,
        out_shape=(f_out, f_out, f_out, f_out, f_out, b_out, b_out, b_out),
        grid=grid,
        in_specs=[spec],
        out_specs=(spec,) * 8,
        compiler_params=pltpu.CompilerParams(
            dimension_semantics=("parallel",),     # dual-TC sharding on v7x
            vmem_limit_bytes=32 * 1024 * 1024,     # safe on all generations
        ),
        # ~27 B/element (1x f32 read, 5x f32 + 3x bool writes); tells XLA this
        # is a large memory-bound custom call.
        cost_estimate=pl.CostEstimate(
            flops=8 * n, transcendentals=0, bytes_accessed=27 * n),
    )(x2d)


@functools.partial(jax.jit, static_argnames=("min_pallas_elems",))
def pt_module_forward(x, *, min_pallas_elems=_MIN_PALLAS_ELEMS):
    """Replicates PtModule.forward: returns the 8-tuple
    (x+5, x-3, x*2, x/2, x**2, x>0, x<10, x==5)."""
    if not jnp.issubdtype(x.dtype, jnp.floating):
        # TODO(synk): integer inputs would need full PyTorch type-promotion
        # (x+5 stays int, x/2 becomes float); cast to float32 as the common case.
        x = x.astype(jnp.float32)

    orig_shape = x.shape
    total = x.size
    flat = x.reshape(-1)
    bulk_rows = total // _LANES
    bulk = bulk_rows * _LANES
    tail = total - bulk

    # Tiny inputs: fused XLA elementwise beats the kernel launch.
    if total < min_pallas_elems or bulk_rows == 0:
        return tuple(o.reshape(orig_shape) for o in _jnp_ops(flat))

    # Lane-dense bulk through the Pallas kernel (reshape is free: 128-aligned).
    bulk_outs = _run_pallas_2d(flat[:bulk].reshape(bulk_rows, _LANES))

    if tail == 0:
        return tuple(o.reshape(orig_shape) for o in bulk_outs)

    # <128-element tail handled in plain JAX; no jnp.pad / per-output slices.
    tail_outs = _jnp_ops(flat[bulk:])
    return tuple(
        jnp.concatenate([b.reshape(-1), t]).reshape(orig_shape)
        for b, t in zip(bulk_outs, tail_outs))


def _check(x, results):
    refs = (x + 5, x - 3, x * 2, x / 2, x ** 2, x > 0, x < 10, x == 5)
    for got, ref in zip(results, refs):
        assert got.shape == ref.shape and got.dtype == ref.dtype
        if got.dtype == jnp.bool_:
            assert bool(jnp.all(got == ref))
        else:
            assert bool(jnp.allclose(got, ref, atol=1e-6))


if __name__ == "__main__":
    key = jax.random.PRNGKey(0)

    # Small NCHW input consistent with an elementwise module; force the Pallas
    # path so the kernel is actually exercised at this size.
    x = jax.random.normal(key, (2, 4, 16, 16), dtype=jnp.float32) * 4.0
    results = jax.block_until_ready(pt_module_forward(x, min_pallas_elems=0))
    _check(x, results)

    # Non-multiple-of-128 size: exercises the Pallas bulk + plain-JAX tail path.
    k1, k2 = jax.random.split(key)
    x_tail = jax.random.normal(k1, (3, 5, 7, 11), dtype=jnp.float32) * 4.0
    _check(x_tail,
           jax.block_until_ready(pt_module_forward(x_tail, min_pallas_elems=0)))

    # Larger input (>= default threshold): exercises the multi-block grid path.
    x_big = jax.random.normal(k2, (4, 8, 32, 64), dtype=jnp.float32) * 4.0
    _check(x_big, jax.block_until_ready(pt_module_forward(x_big)))

    print("KERNEL_OK")
</pallas_src>

<mosaic_0001>
module attributes {stable_mosaic.version = 11 : i64} {
  func.func @_elementwise_kernel(%arg0: i32, %arg1: memref<16x128xf32, #tpu.memory_space<vmem>>, %arg2: memref<16x128xf32, #tpu.memory_space<vmem>>, %arg3: memref<16x128xf32, #tpu.memory_space<vmem>>, %arg4: memref<16x128xf32, #tpu.memory_space<vmem>>, %arg5: memref<16x128xf32, #tpu.memory_space<vmem>>, %arg6: memref<16x128xf32, #tpu.memory_space<vmem>>, %arg7: memref<16x128xi32, #tpu.memory_space<vmem>>, %arg8: memref<16x128xi32, #tpu.memory_space<vmem>>, %arg9: memref<16x128xi32, #tpu.memory_space<vmem>>) attributes {dimension_semantics = [#tpu.dimension_semantics<parallel>], iteration_bounds = array<i64: 1>, scalar_prefetch = 0 : i64, scratch_operands = 0 : i64, tpu.core_type = #tpu.core_type<tc>, window_params = [{transform_indices = @transform_0, window_bounds = array<i64: 16, 128>}, {transform_indices = @transform_1, window_bounds = array<i64: 16, 128>}, {transform_indices = @transform_2, window_bounds = array<i64: 16, 128>}, {transform_indices = @transform_3, window_bounds = array<i64: 16, 128>}, {transform_indices = @transform_4, window_bounds = array<i64: 16, 128>}, {transform_indices = @transform_5, window_bounds = array<i64: 16, 128>}, {transform_indices = @transform_6, window_bounds = array<i64: 16, 128>}, {transform_indices = @transform_7, window_bounds = array<i64: 16, 128>}, {transform_indices = @transform_8, window_bounds = array<i64: 16, 128>}]} {
    %c0 = arith.constant 0 : index
    %c0_0 = arith.constant 0 : index
    %0 = vector.load %arg1[%c0, %c0_0] : memref<16x128xf32, #tpu.memory_space<vmem>>, vector<16x128xf32>
    %cst = arith.constant 5.000000e+00 : f32
    %1 = vector.broadcast %cst : f32 to vector<16x128xf32>
    %2 = arith.addf %0, %1 : vector<16x128xf32>
    %c0_1 = arith.constant 0 : index
    %c0_2 = arith.constant 0 : index
    %3 = vector.load %arg2[%c0_1, %c0_2] : memref<16x128xf32, #tpu.memory_space<vmem>>, vector<16x128xf32>
    tpu.vector_store %arg2[%c0_1, %c0_2], %2 {strides = array<i32>} : memref<16x128xf32, #tpu.memory_space<vmem>>, vector<16x128xf32>,
    %cst_3 = arith.constant 3.000000e+00 : f32
    %4 = vector.broadcast %cst_3 : f32 to vector<16x128xf32>
    %5 = arith.subf %0, %4 : vector<16x128xf32>
    %c0_4 = arith.constant 0 : index
    %c0_5 = arith.constant 0 : index
    %6 = vector.load %arg3[%c0_4, %c0_5] : memref<16x128xf32, #tpu.memory_space<vmem>>, vector<16x128xf32>
    tpu.vector_store %arg3[%c0_4, %c0_5], %5 {strides = array<i32>} : memref<16x128xf32, #tpu.memory_space<vmem>>, vector<16x128xf32>,
    %cst_6 = arith.constant 2.000000e+00 : f32
    %7 = vector.broadcast %cst_6 : f32 to vector<16x128xf32>
    %8 = arith.mulf %0, %7 : vector<16x128xf32>
    %c0_7 = arith.constant 0 : index
    %c0_8 = arith.constant 0 : index
    %9 = vector.load %arg4[%c0_7, %c0_8] : memref<16x128xf32, #tpu.memory_space<vmem>>, vector<16x128xf32>
    tpu.vector_store %arg4[%c0_7, %c0_8], %8 {strides = array<i32>} : memref<16x128xf32, #tpu.memory_space<vmem>>, vector<16x128xf32>,
    %cst_9 = arith.constant 5.000000e-01 : f32
    %10 = vector.broadcast %cst_9 : f32 to vector<16x128xf32>
    %11 = arith.mulf %0, %10 : vector<16x128xf32>
    %c0_10 = arith.constant 0 : index
    %c0_11 = arith.constant 0 : index
    %12 = vector.load %arg5[%c0_10, %c0_11] : memref<16x128xf32, #tpu.memory_space<vmem>>, vector<16x128xf32>
    tpu.vector_store %arg5[%c0_10, %c0_11], %11 {strides = array<i32>} : memref<16x128xf32, #tpu.memory_space<vmem>>, vector<16x128xf32>,
    %13 = arith.mulf %0, %0 : vector<16x128xf32>
    %c0_12 = arith.constant 0 : index
    %c0_13 = arith.constant 0 : index
    %14 = vector.load %arg6[%c0_12, %c0_13] : memref<16x128xf32, #tpu.memory_space<vmem>>, vector<16x128xf32>
    tpu.vector_store %arg6[%c0_12, %c0_13], %13 {strides = array<i32>} : memref<16x128xf32, #tpu.memory_space<vmem>>, vector<16x128xf32>,
    %cst_14 = arith.constant 0.000000e+00 : f32
    %15 = vector.broadcast %cst_14 : f32 to vector<16x128xf32>
    %16 = arith.cmpf ogt, %0, %15 : vector<16x128xf32>
    %c0_15 = arith.constant 0 : index
    %c0_16 = arith.constant 0 : index
    %17 = vector.load %arg7[%c0_15, %c0_16] : memref<16x128xi32, #tpu.memory_space<vmem>>, vector<16x128xi32>
    %18 = arith.extui %16 : vector<16x128xi1> to vector<16x128xi32>
    %cst_17 = arith.constant dense<0> : vector<16x128xi32>
    %19 = arith.cmpi ne, %17, %cst_17 : vector<16x128xi32>
    tpu.vector_store %arg7[%c0_15, %c0_16], %18 {strides = array<i32>} : memref<16x128xi32, #tpu.memory_space<vmem>>, vector<16x128xi32>,
    %cst_18 = arith.constant 1.000000e+01 : f32
    %20 = vector.broadcast %cst_18 : f32 to vector<16x128xf32>
    %21 = arith.cmpf olt, %0, %20 : vector<16x128xf32>
    %c0_19 = arith.constant 0 : index
    %c0_20 = arith.constant 0 : index
    %22 = vector.load %arg8[%c0_19, %c0_20] : memref<16x128xi32, #tpu.memory_space<vmem>>, vector<16x128xi32>
    %23 = arith.extui %21 : vector<16x128xi1> to vector<16x128xi32>
    %cst_21 = arith.constant dense<0> : vector<16x128xi32>
    %24 = arith.cmpi ne, %22, %cst_21 : vector<16x128xi32>
    tpu.vector_store %arg8[%c0_19, %c0_20], %23 {strides = array<i32>} : memref<16x128xi32, #tpu.memory_space<vmem>>, vector<16x128xi32>,
    %cst_22 = arith.constant 5.000000e+00 : f32
    %25 = vector.broadcast %cst_22 : f32 to vector<16x128xf32>
    %26 = arith.cmpf oeq, %0, %25 : vector<16x128xf32>
    %c0_23 = arith.constant 0 : index
    %c0_24 = arith.constant 0 : index
    %27 = vector.load %arg9[%c0_23, %c0_24] : memref<16x128xi32, #tpu.memory_space<vmem>>, vector<16x128xi32>
    %28 = arith.extui %26 : vector<16x128xi1> to vector<16x128xi32>
    %cst_25 = arith.constant dense<0> : vector<16x128xi32>
    %29 = arith.cmpi ne, %27, %cst_25 : vector<16x128xi32>
    tpu.vector_store %arg9[%c0_23, %c0_24], %28 {strides = array<i32>} : memref<16x128xi32, #tpu.memory_space<vmem>>, vector<16x128xi32>,
    return
  }
  func.func @transform_0(%arg0: i32) -> (i32, i32) {
    %c0_i32 = arith.constant 0 : i32
    %c0_i32_0 = arith.constant 0 : i32
    return %arg0, %c0_i32 : i32, i32
  }
  func.func @transform_1(%arg0: i32) -> (i32, i32) {
    %c0_i32 = arith.constant 0 : i32
    %c0_i32_0 = arith.constant 0 : i32
    return %arg0, %c0_i32 : i32, i32
  }
  func.func @transform_2(%arg0: i32) -> (i32, i32) {
    %c0_i32 = arith.constant 0 : i32
    %c0_i32_0 = arith.constant 0 : i32
    return %arg0, %c0_i32 : i32, i32
  }
  func.func @transform_3(%arg0: i32) -> (i32, i32) {
    %c0_i32 = arith.constant 0 : i32
    %c0_i32_0 = arith.constant 0 : i32
    return %arg0, %c0_i32 : i32, i32
  }
  func.func @transform_4(%arg0: i32) -> (i32, i32) {
    %c0_i32 = arith.constant 0 : i32
    %c0_i32_0 = arith.constant 0 : i32
    return %arg0, %c0_i32 : i32, i32
  }
  func.func @transform_5(%arg0: i32) -> (i32, i32) {
    %c0_i32 = arith.constant 0 : i32
    %c0_i32_0 = arith.constant 0 : i32
    return %arg0, %c0_i32 : i32, i32
  }
  func.func @transform_6(%arg0: i32) -> (i32, i32) {
    %c0_i32 = arith.constant 0 : i32
    %c0_i32_0 = arith.constant 0 : i32
    return %arg0, %c0_i32 : i32, i32
  }
  func.func @transform_7(%arg0: i32) -> (i32, i32) {
    %c0_i32 = arith.constant 0 : i32
    %c0_i32_0 = arith.constant 0 : i32
    return %arg0, %c0_i32 : i32, i32
  }
  func.func @transform_8(%arg0: i32) -> (i32, i32) {
    %c0_i32 = arith.constant 0 : i32
    %c0_i32_0 = arith.constant 0 : i32
    return %arg0, %c0_i32 : i32, i32
  }
}

</mosaic_0001>

<bundles_post_ra>
// kernel: pt_module_forward.1
= control target key start
LH: loop header
LB: loop body
LE: loop exit
PB: predicated region body
PF: predicated region fallthrough
CT: control target
= control target key end

     0   :  { %v91_v12 = vmov 0   ;;  %s191_s0 = inlined_call_operand.vmem [shape: f32[16,128], index: 0, kind: input, shape index: {}]   ;;  %s192_s1 = inlined_call_operand.vmem [shape: f32[16,128], index: 1, kind: output, shape index: {0}]   ;;  %s193_s2 = inlined_call_operand.vmem [shape: f32[16,128], index: 2, kind: output, shape index: {1}]   ;;  %s194_s3 = inlined_call_operand.vmem [shape: f32[16,128], index: 3, kind: output, shape index: {2}]   ;;  %s195_s4 = inlined_call_operand.vmem [shape: f32[16,128], index: 4, kind: output, shape index: {3}]   ;;  %s196_s5 = inlined_call_operand.vmem [shape: f32[16,128], index: 5, kind: output, shape index: {4}]   ;;  %s197_s6 = inlined_call_operand.vmem [shape: s32[16,128], index: 6, kind: output, shape index: {5}]   ;;  %s198_s7 = inlined_call_operand.vmem [shape: s32[16,128], index: 7, kind: output, shape index: {6}]   ;;  %s199_s8 = inlined_call_operand.vmem [shape: s32[16,128], index: 8, kind: output, shape index: {7}]  }
   0x1   :  { %v16_v0 = vld [vmem:[%s191_s0] sm:$0xff]  ;;  %v17_v1 = vld [vmem:[%s191_s0 + $0x8] sm:$0xff] }
   0x2   :  { %v18_v2 = vadd.f32 5.0, %v16_v0  ;;  %v19_v3 = vadd.f32 5.0, %v17_v1  ;;  %v88_v4 = vadd.f32 -3.0, %v16_v0  ;;  %v89_v5 = vadd.f32 -3.0, %v17_v1 }
   0x3   :  { %v26_v6 = vmul.f32 2.0, %v16_v0  ;;  %v27_v7 = vmul.f32 2.0, %v17_v1  ;;  %v30_v8 = vmul.f32 0.5, %v16_v0  ;;  %v31_v9 = vmul.f32 0.5, %v17_v1 }
   0x4   :  { %20 = vst [vmem:[%s192_s1] sm:$0xff] %v18_v2  ;;  %v34_v10 = vmul.f32 %v16_v0, %v16_v0  ;;  %vm38_vm0 = vcmp.gt.f32.partialorder %v16_v0, 0.0  ;;  %v35_v11 = vmul.f32 %v17_v1, %v17_v1  ;;  %vm39_vm1 = vcmp.gt.f32.partialorder %v17_v1, 0.0 }
   0x5   :  { %21 = vst [vmem:[%s192_s1 + $0x8] sm:$0xff] %v19_v3  ;;  %vm44_vm2 = vcmp.lt.f32.partialorder %v16_v0, 10.0  ;;  %v40_v13 = vsel %vm38_vm0, 1, %v91_v12  ;;  %vm45_vm3 = vcmp.lt.f32.partialorder %v17_v1, 10.0  ;;  %v41_v14 = vsel %vm39_vm1, 1, %v91_v12 }
   0x6   :  { %24 = vst [vmem:[%s193_s2] sm:$0xff] %v88_v4  ;;  %vm50_vm4 = vcmp.eq.f32.partialorder %v16_v0, 5.0  ;;  %v46_v15 = vsel %vm44_vm2, 1, %v91_v12  ;;  %vm51_vm5 = vcmp.eq.f32.partialorder %v17_v1, 5.0  ;;  %v47_v16 = vsel %vm45_vm3, 1, %v91_v12 }
   0x7   :  { %25 = vst [vmem:[%s193_s2 + $0x8] sm:$0xff] %v89_v5  ;;  %v52_v17 = vsel %vm50_vm4, 1, %v91_v12  ;;  %v53_v18 = vsel %vm51_vm5, 1, %v91_v12 }
   0x8   :  { %28 = vst [vmem:[%s194_s3] sm:$0xff] %v26_v6 }
   0x9   :  { %29 = vst [vmem:[%s194_s3 + $0x8] sm:$0xff] %v27_v7 }
   0xa   :  { %32 = vst [vmem:[%s195_s4] sm:$0xff] %v30_v8 }
   0xb   :  { %33 = vst [vmem:[%s195_s4 + $0x8] sm:$0xff] %v31_v9 }
   0xc   :  { %36 = vst [vmem:[%s196_s5] sm:$0xff] %v34_v10 }
   0xd   :  { %37 = vst [vmem:[%s196_s5 + $0x8] sm:$0xff] %v35_v11 }
   0xe   :  { %42 = vst [vmem:[%s197_s6] sm:$0xff] %v40_v13 }
   0xf   :  { %43 = vst [vmem:[%s197_s6 + $0x8] sm:$0xff] %v41_v14 }
  0x10   :  { %48 = vst [vmem:[%s198_s7] sm:$0xff] %v46_v15 }
  0x11   :  { %49 = vst [vmem:[%s198_s7 + $0x8] sm:$0xff] %v47_v16 }
  0x12   :  { %54 = vst [vmem:[%s199_s8] sm:$0xff] %v52_v17 }
  0x13   :  { %55 = vst [vmem:[%s199_s8 + $0x8] sm:$0xff] %v53_v18 }

</bundles_post_ra>
